<compile_context>
chip_gen: v7x
topology: tpu7x:2x2x1
jax: 0.10.0
libtpu: 0.0.40
codegen_flags: <defaults>
</compile_context>

<pallas_src>
import functools

import jax
import jax.numpy as jnp
from jax.experimental import pallas as pl
from jax.experimental.pallas import tpu as pltpu

_LANE = 128


def _surrogate_kernel(alpha_ref, x_ref, o_ref, *, spiking):
    x = x_ref[...]
    if spiking:
        # Heaviside step (alpha unused in the forward of the spiking path).
        # Convention: x == 0 -> 1.0 (matches SpikingJelly, differs from torch.heaviside(values=0)).
        o_ref[...] = (x >= 0).astype(o_ref.dtype)
    else:
        # primitive surrogate: sigmoid(alpha * x) == 0.5 * (1 + tanh(0.5 * alpha * x))
        # -> single tanh on the EUP instead of exp + exact reciprocal.
        alpha = alpha_ref[0]
        z = (0.5 * alpha) * x.astype(jnp.float32)
        o_ref[...] = (0.5 * (jnp.tanh(z) + 1.0)).astype(o_ref.dtype)


def _choose_lane_width(total):
    # widest lane-dense layout that divides the flat size exactly (no padding needed)
    for lanes in (8192, 4096, 2048, 1024, 512, 256, _LANE):
        if total % lanes == 0:
            return lanes
    return None


def surrogate_forward(x, alpha, spiking=True):
    """Pallas implementation of SurrogateFunctionBase.forward (Sigmoid surrogate)."""
    orig_shape = x.shape
    orig_dtype = x.dtype
    total = x.size

    # alpha lives in SMEM; works for Python floats and traced jnp scalars alike.
    alpha_arr = jnp.asarray(alpha, dtype=jnp.float32).reshape((1,))

    lanes = _choose_lane_width(total)
    pad = 0
    x_flat = jnp.reshape(x, (total,))
    if lanes is None:
        # TODO(synk): flat sizes not divisible by 128 take a tiny (<128 elem) pad path,
        # which materializes one extra copy; the common activation shapes avoid it.
        lanes = _LANE
        pad = (-total) % lanes
        x_flat = jnp.pad(x_flat, (0, pad))
    rows = (total + pad) // lanes
    x2d = jnp.reshape(x_flat, (rows, lanes))

    # Block sizing: ~2 MiB per block; respect sublane packing per dtype
    # (8 rows f32, 16 bf16, 32 int8). Partial last block handled by pl.cdiv grid.
    itemsize = jnp.dtype(orig_dtype).itemsize
    sublane_pack = max(8, 32 // itemsize)
    target_rows = max(1, (2 * 1024 * 1024) // (lanes * itemsize))
    if target_rows >= rows:
        block_rows = rows  # full extent -> single / few blocks, always legal
    else:
        block_rows = max(sublane_pack, (target_rows // sublane_pack) * sublane_pack)
    grid = pl.cdiv(rows, block_rows)

    kernel = functools.partial(_surrogate_kernel, spiking=bool(spiking))

    out2d = pl.pallas_call(
        kernel,
        out_shape=jax.ShapeDtypeStruct((rows, lanes), orig_dtype),
        grid_spec=pltpu.PrefetchScalarGridSpec(
            num_scalar_prefetch=0,
            grid=(grid,),
            in_specs=[
                pl.BlockSpec(memory_space=pltpu.MemorySpace.SMEM),        # alpha scalar
                pl.BlockSpec((block_rows, lanes), lambda i: (i, 0)),      # x tile
            ],
            out_specs=pl.BlockSpec((block_rows, lanes), lambda i: (i, 0)),
        ),
        compiler_params=pltpu.CompilerParams(
            dimension_semantics=("parallel",),
        ),
    )(alpha_arr, x2d)

    if pad:
        out_flat = jnp.reshape(out2d, (total + pad,))[:total]
        return jnp.reshape(out_flat, orig_shape)
    return jnp.reshape(out2d, orig_shape)


if __name__ == "__main__":
    key = jax.random.PRNGKey(0)
    # small NCHW input consistent with a typical SNN activation tensor
    x = jax.random.normal(key, (2, 4, 16, 16), dtype=jnp.float32)
    alpha = 2.0

    # spiking=True path (Heaviside step)
    y_spike = surrogate_forward(x, alpha, spiking=True)
    y_spike = jax.block_until_ready(y_spike)

    # spiking=False path (primitive: sigmoid(alpha * x))
    y_prim = surrogate_forward(x, alpha, spiking=False)
    y_prim = jax.block_until_ready(y_prim)

    # verify against plain-JAX reference
    ref_spike = (x >= 0).astype(jnp.float32)
    ref_prim = jax.nn.sigmoid(alpha * x)
    assert y_spike.shape == x.shape and y_spike.dtype == x.dtype
    assert y_prim.shape == x.shape and y_prim.dtype == x.dtype
    assert jnp.allclose(y_spike, ref_spike)
    assert jnp.allclose(y_prim, ref_prim, atol=1e-5)

    print("KERNEL_OK")
</pallas_src>

<mosaic_0001>
module attributes {stable_mosaic.version = 11 : i64} {
  func.func @_surrogate_kernel(%arg0: i32, %arg1: memref<1xf32, #tpu.memory_space<smem>>, %arg2: memref<1x2048xf32, #tpu.memory_space<vmem>>, %arg3: memref<1x2048xf32, #tpu.memory_space<vmem>>) attributes {dimension_semantics = [#tpu.dimension_semantics<parallel>], iteration_bounds = array<i64: 1>, scalar_prefetch = 0 : i64, scratch_operands = 0 : i64, tpu.core_type = #tpu.core_type<tc>, window_params = [{transform_indices = @transform_0, window_bounds = array<i64: 1>}, {transform_indices = @transform_1, window_bounds = array<i64: 1, 2048>}, {transform_indices = @transform_2, window_bounds = array<i64: 1, 2048>}]} {
    %c0 = arith.constant 0 : index
    %c0_0 = arith.constant 0 : index
    %0 = vector.load %arg2[%c0, %c0_0] : memref<1x2048xf32, #tpu.memory_space<vmem>>, vector<1x2048xf32>
    %cst = arith.constant 0.000000e+00 : f32
    %1 = vector.broadcast %cst : f32 to vector<1x2048xf32>
    %2 = arith.cmpf oge, %0, %1 : vector<1x2048xf32>
    %3 = arith.extui %2 : vector<1x2048xi1> to vector<1x2048xi32>
    %4 = arith.sitofp %3 : vector<1x2048xi32> to vector<1x2048xf32>
    %c0_1 = arith.constant 0 : index
    %c0_2 = arith.constant 0 : index
    %5 = vector.load %arg3[%c0_1, %c0_2] : memref<1x2048xf32, #tpu.memory_space<vmem>>, vector<1x2048xf32>
    tpu.vector_store %arg3[%c0_1, %c0_2], %4 {strides = array<i32>} : memref<1x2048xf32, #tpu.memory_space<vmem>>, vector<1x2048xf32>,
    return
  }
  func.func @transform_0(%arg0: i32) -> i32 {
    %c0_i32 = arith.constant 0 : i32
    %c0_i32_0 = arith.constant 0 : i32
    return %c0_i32 : i32
  }
  func.func @transform_1(%arg0: i32) -> (i32, i32) {
    %c0_i32 = arith.constant 0 : i32
    %c0_i32_0 = arith.constant 0 : i32
    return %arg0, %c0_i32 : i32, i32
  }
  func.func @transform_2(%arg0: i32) -> (i32, i32) {
    %c0_i32 = arith.constant 0 : i32
    %c0_i32_0 = arith.constant 0 : i32
    return %arg0, %c0_i32 : i32, i32
  }
}

</mosaic_0001>

<bundles_post_ra>
// kernel: tpu_custom_call.1
= control target key start
LH: loop header
LB: loop body
LE: loop exit
PB: predicated region body
PF: predicated region fallthrough
CT: control target
= control target key end

     0   :  { %8 = vsyncpa [#allocation4], 0  ;;  %s145_s0 = inlined_call_operand.<no memory space> [shape: f32[1], index: 0, kind: input, shape index: {}]   ;;  %s146_s1 = inlined_call_operand.hbm [shape: f32[1,2048], index: 1, kind: input, shape index: {}]   ;;  %s147_s2 = inlined_call_operand.hbm [shape: f32[1,2048], index: 2, kind: output, shape index: {}]  }
   0x1   :  { %9 = vsyncpa [#allocation5], 0  ;;  %s103_s9 = smov [#allocation3]   ;;  %s55_s13 = scalar_lea.hbm %s146_s1, 256 }
   0x2   :  { %s18_s10 = sshll.u32 %s103_s9, 4  ;;  %p56_p0 = scmp.ne.s32.totalorder %s146_s1, %s55_s13  ;;  %s19_s10 = int_to_ptr.vmem [resolvable:$true] %s18_s10 }
   0x3   :  { %p59_p1 = scmp.lt.u32.totalorder %s55_s13, %s146_s1 }
   0x5   :  { %p61_p2 = pnand %p59_p1, %p56_p0 }
   0x7   :  { %64 = shalt.err (!%p61_p2)
}
   0x8   :  { %s65_s17 = scalar_lea.vmem %s19_s10, 256  ;;  %p70_p4 = scmp.lt.s32.totalorder %s19_s10, %s19_s10 }
   0x9   :  { %p66_p3 = scmp.ne.s32.totalorder %s19_s10, %s65_s17  ;;  %p71_p5 = scmp.lt.s32.totalorder %s65_s17, %s65_s17 }
   0xb   :  { %p72_p6 = por %p71_p5, %p70_p4 }
   0xd   :  { %p73_p7 = pnand %p72_p6, %p66_p3 }
   0xf   :  { %76 = shalt.err (!%p73_p7)
}
  0x10   :  { %21 = dma.hbm_to_vmem [thread:$0]  %s146_s1, 256, %s19_s10, [#allocation4]  }
  0x11   :  { %99 = dma.done.wait [#allocation4], 256  }
  0x12   :  { %100 = vsyncadd [#allocation4], 4294967040  ;;  %s104_s20 = smov [#allocation6]   ;;  %v25_v0 = vld [vmem:[#allocation3] sm:$0xff]  ;;  %v26_v1 = vld [vmem:[#allocation3 + $0x8] sm:$0xff]  ;;  %v105_v2 = vmov 0.0  }
  0x13   :  { %s41_s21 = sshll.u32 %s104_s20, 4  ;;  %vm27_vm0 = vcmp.ge.f32.partialorder %v25_v0, 0.0  ;;  %vm28_vm1 = vcmp.ge.f32.partialorder %v26_v1, 0.0  ;;  %s42_s21 = int_to_ptr.vmem [resolvable:$true] %s41_s21 }
  0x14   :  { %v50_v3 = vsel %vm27_vm0, 1.0, %v105_v2  ;;  %v51_v4 = vsel %vm28_vm1, 1.0, %v105_v2  ;;  %s77_s22 = scalar_lea.vmem %s42_s21, 256  ;;  %p82_p9 = scmp.lt.s32.totalorder %s42_s21, %s42_s21 }
  0x15   :  { %33 = vst [vmem:[#allocation6] sm:$0xff] %v50_v3  ;;  %34 = vst [vmem:[#allocation6 + $0x8] sm:$0xff] %v51_v4  ;;  %p78_p8 = scmp.ne.s32.totalorder %s42_s21, %s77_s22  ;;  %p83_p10 = scmp.lt.s32.totalorder %s77_s22, %s77_s22 }
  0x17   :  { %p84_p11 = por %p83_p10, %p82_p9 }
  0x19   :  { %p85_p12 = pnand %p84_p11, %p78_p8 }
  0x1b   :  { %88 = shalt.err (!%p85_p12)
}
  0x1c   :  { %s89_s24 = scalar_lea.hbm %s147_s2, 256 }
  0x1d   :  { %p90_p13 = scmp.ne.s32.totalorder %s147_s2, %s89_s24  ;;  %p93_p0 = scmp.lt.u32.totalorder %s89_s24, %s147_s2 }
  0x1f   :  { %p95_p1 = pnand %p93_p0, %p90_p13 }
  0x21   :  { %98 = shalt.err (!%p95_p1)
}
  0x22   :  { %44 = dma.vmem_to_hbm [thread:$0]  %s42_s21, 256, %s147_s2, [#allocation5]  }
  0x23   :  { %101 = dma.done.wait [#allocation5], 256  }
  0x24   :  { %102 = vsyncadd [#allocation5], 4294967040 }
  0x25   :  { %48 = vsyncpa [#allocation4], 1 }
  0x26   :  { %49 = vsyncpa [#allocation5], 1 }

</bundles_post_ra>
